<compile_context>
chip_gen: v7x
topology: tpu7x:2x2x1
jax: 0.10.0
libtpu: 0.0.40
codegen_flags: <defaults>
</compile_context>

<pallas_src>
import functools

import jax
import jax.numpy as jnp
from jax.experimental import pallas as pl
from jax.experimental.pallas import tpu as pltpu


# ----------------------------------------------------------------------------
# Hoisted input projection: one big (T*B, D) x (D, 4H) matmul (+ bias folded in).
# ----------------------------------------------------------------------------
def _proj_kernel(x_ref, w_ref, b_ref, o_ref):
    o_ref[...] = (
        jnp.dot(x_ref[...], w_ref[...], preferred_element_type=jnp.float32)
        + b_ref[...]
    )


def input_projection(x_flat, w_t, b, block_m=512):
    """x_flat: (M, D) bf16, w_t: (D, 4H) bf16, b: (1, 4H) f32 -> (M, 4H) f32."""
    M, D = x_flat.shape
    N = w_t.shape[1]
    bm = block_m if (M > block_m and M % block_m == 0) else M
    return pl.pallas_call(
        _proj_kernel,
        out_shape=jax.ShapeDtypeStruct((M, N), jnp.float32),
        grid_spec=pltpu.PrefetchScalarGridSpec(
            num_scalar_prefetch=0,
            grid=(M // bm,),
            in_specs=[
                pl.BlockSpec((bm, D), lambda i: (i, 0)),
                pl.BlockSpec((D, N), lambda i: (0, 0)),
                pl.BlockSpec((1, N), lambda i: (0, 0)),
            ],
            out_specs=pl.BlockSpec((bm, N), lambda i: (i, 0)),
        ),
        compiler_params=pltpu.CompilerParams(
            dimension_semantics=("parallel",)),
    )(x_flat, w_t, b)


# ----------------------------------------------------------------------------
# Fused recurrent kernel: all layers + all time steps + final FC in one call.
# ----------------------------------------------------------------------------
def _lstm_cell(gates, c_prev, hidden_dim):
    """gates: (B, 4H) f32, PyTorch order i,f,g,o.  Returns (h_new, c_new) f32."""
    H = hidden_dim
    i_g = jax.nn.sigmoid(gates[:, 0 * H:1 * H])
    f_g = jax.nn.sigmoid(gates[:, 1 * H:2 * H])
    g_g = jnp.tanh(gates[:, 2 * H:3 * H])
    o_g = jax.nn.sigmoid(gates[:, 3 * H:4 * H])
    c_new = f_g * c_prev + i_g * g_g
    h_new = o_g * jnp.tanh(c_new)
    return h_new, c_new


def _fused_lstm_kernel(x_proj_ref, w_hh0_ref, *args,
                       num_layers, hidden_dim, seq_len):
    H = hidden_dim
    T = seq_len
    L = num_layers
    B = x_proj_ref.shape[1]

    n_inner = L - 1
    inner_refs = args[:2 * n_inner]
    w_fc_ref, b_fc_ref, out_ref = args[2 * n_inner:]

    # Load weights once; hoist bias broadcasts out of the serial time loop.
    w_hh0 = w_hh0_ref[...]                                          # (H, 4H) bf16
    inner = []
    for l in range(n_inner):
        w_cat = inner_refs[2 * l][...]                              # (2H, 4H) bf16
        b = jnp.broadcast_to(inner_refs[2 * l + 1][...], (B, 4 * H))  # (B, 4H) f32
        inner.append((w_cat, b))

    def step(t, carry):
        hs, cs = carry
        # Layer 0: input projection (incl. bias) was precomputed outside the
        # recurrence; only the recurrent matmul remains inside the serial loop.
        gates0 = x_proj_ref[t] + jnp.dot(
            hs[0].astype(w_hh0.dtype), w_hh0,
            preferred_element_type=jnp.float32)
        h_new, c_new = _lstm_cell(gates0, cs[0], H)
        new_hs, new_cs = [h_new], [c_new]
        below = h_new
        for l in range(n_inner):
            w_cat, b = inner[l]
            # One fused MXU push: [h_below, h_prev] @ [W_ih^T ; W_hh^T].
            inp = jnp.concatenate([below, hs[l + 1]], axis=1).astype(w_cat.dtype)
            gates = jnp.dot(inp, w_cat, preferred_element_type=jnp.float32) + b
            h_l, c_l = _lstm_cell(gates, cs[l + 1], H)
            new_hs.append(h_l)
            new_cs.append(c_l)
            below = h_l
        return tuple(new_hs), tuple(new_cs)

    zeros = jnp.zeros((B, H), jnp.float32)
    init = (tuple(zeros for _ in range(L)), tuple(zeros for _ in range(L)))
    hs, _ = jax.lax.fori_loop(0, T, step, init)

    # Final nn.Linear fused in, applied to the top layer's last hidden state
    # (== out[:, -1, :] with eval-mode dropout).  Only HBM output: (B, O).
    h_top = hs[-1].astype(w_fc_ref.dtype)
    out_ref[...] = (
        jnp.dot(h_top, w_fc_ref[...], preferred_element_type=jnp.float32)
        + b_fc_ref[...]
    )


def fused_lstm(x_proj, params, hidden_dim, batch_block=None):
    """x_proj: (T, B, 4H) f32 time-major layer-0 pre-activations. Returns (B, O)."""
    T, B, fourH = x_proj.shape
    H = hidden_dim
    L = len(params["layers"])
    O = params["fc_w_t"].shape[1]

    # Batch tiling: the recurrence is independent across batch rows, so this
    # grid axis is "parallel" (megacore sharding on multi-TC chips).
    bb = B if batch_block is None else min(batch_block, B)
    if B % bb != 0:
        bb = B
    n_b = B // bb

    args = [x_proj, params["layers"][0]["w_hh_t"]]
    in_specs = [
        pl.BlockSpec((T, bb, fourH), lambda b: (0, b, 0)),
        pl.BlockSpec((H, fourH), lambda b: (0, 0)),
    ]
    for lp in params["layers"][1:]:
        args += [lp["w_cat_t"], lp["b"]]
        in_specs += [
            pl.BlockSpec((2 * H, fourH), lambda b: (0, 0)),
            pl.BlockSpec((1, fourH), lambda b: (0, 0)),
        ]
    args += [params["fc_w_t"], params["fc_b"]]
    in_specs += [
        pl.BlockSpec((H, O), lambda b: (0, 0)),
        pl.BlockSpec((1, O), lambda b: (0, 0)),
    ]

    kernel = functools.partial(
        _fused_lstm_kernel, num_layers=L, hidden_dim=H, seq_len=T)

    return pl.pallas_call(
        kernel,
        out_shape=jax.ShapeDtypeStruct((B, O), jnp.float32),
        grid_spec=pltpu.PrefetchScalarGridSpec(
            num_scalar_prefetch=0,
            grid=(n_b,),
            in_specs=in_specs,
            out_specs=pl.BlockSpec((bb, O), lambda b: (b, 0)),
        ),
        compiler_params=pltpu.CompilerParams(
            dimension_semantics=("parallel",)),
    )(*args)


# ----------------------------------------------------------------------------
# Parameters (nn.LSTM / nn.Linear shapes) and wrappers.
# ----------------------------------------------------------------------------
def init_lstm_params(key, input_dim, hidden_dim, num_layers, output_dim):
    """Deterministic init matching nn.LSTM/nn.Linear; matmul weights stored bf16."""
    H = hidden_dim
    params = {"layers": []}
    k = 1.0 / jnp.sqrt(H)
    for layer in range(num_layers):
        d_in = input_dim if layer == 0 else H
        key, k1, k2, k3, k4 = jax.random.split(key, 5)
        w_ih = jax.random.uniform(k1, (4 * H, d_in), jnp.float32, -k, k)
        w_hh = jax.random.uniform(k2, (4 * H, H), jnp.float32, -k, k)
        b_ih = jax.random.uniform(k3, (4 * H,), jnp.float32, -k, k)
        b_hh = jax.random.uniform(k4, (4 * H,), jnp.float32, -k, k)
        b = (b_ih + b_hh)[None, :]                                  # (1, 4H) f32
        if layer == 0:
            params["layers"].append({
                "w_ih_t": w_ih.T.astype(jnp.bfloat16),              # (D, 4H)
                "w_hh_t": w_hh.T.astype(jnp.bfloat16),              # (H, 4H)
                "b": b,
            })
        else:
            w_cat_t = jnp.concatenate([w_ih.T, w_hh.T], axis=0)     # (2H, 4H)
            params["layers"].append({
                "w_cat_t": w_cat_t.astype(jnp.bfloat16),
                "b": b,
            })
    key, k5, k6 = jax.random.split(key, 3)
    kf = 1.0 / jnp.sqrt(H)
    w_fc = jax.random.uniform(k5, (output_dim, H), jnp.float32, -kf, kf)
    b_fc = jax.random.uniform(k6, (output_dim,), jnp.float32, -kf, kf)
    params["fc_w_t"] = w_fc.T.astype(jnp.bfloat16)                  # (H, O)
    params["fc_b"] = b_fc[None, :]                                  # (1, O) f32
    return params


def lstm_forward(params, x_btd, hidden_dim):
    """x_btd: (B, T, D) batch_first, like the PyTorch module. Returns (B, O) f32."""
    B, T, D = x_btd.shape
    H = hidden_dim
    l0 = params["layers"][0]
    # Hoisted layer-0 input projection: one MXU-friendly (T*B, D) x (D, 4H) matmul.
    x_flat = x_btd.reshape(B * T, D).astype(jnp.bfloat16)
    xp = input_projection(x_flat, l0["w_ih_t"], l0["b"])            # (B*T, 4H) f32
    x_proj = xp.reshape(B, T, 4 * H).transpose(1, 0, 2)             # (T, B, 4H)
    # dropout(p=0.01): identity in eval mode.
    return fused_lstm(x_proj, params, hidden_dim)


def lstm_forward_ref(params, x_btd, hidden_dim):
    """Pure-JAX fp32 reference of the same forward (for correctness checking)."""
    H = hidden_dim
    x = jnp.transpose(x_btd, (1, 0, 2)).astype(jnp.float32)         # (T, B, D)
    T, B, _ = x.shape
    seq = x
    for l, lp in enumerate(params["layers"]):
        if l == 0:
            w_in = lp["w_ih_t"].astype(jnp.float32)
            w_hh = lp["w_hh_t"].astype(jnp.float32)
        else:
            w_cat = lp["w_cat_t"].astype(jnp.float32)
            w_in, w_hh = w_cat[:H], w_cat[H:]
        b = lp["b"]
        h = jnp.zeros((B, H), jnp.float32)
        c = jnp.zeros((B, H), jnp.float32)
        outs = []
        for t in range(T):
            gates = seq[t] @ w_in + h @ w_hh + b
            i_g = jax.nn.sigmoid(gates[:, 0 * H:1 * H])
            f_g = jax.nn.sigmoid(gates[:, 1 * H:2 * H])
            g_g = jnp.tanh(gates[:, 2 * H:3 * H])
            o_g = jax.nn.sigmoid(gates[:, 3 * H:4 * H])
            c = f_g * c + i_g * g_g
            h = o_g * jnp.tanh(c)
            outs.append(h)
        seq = jnp.stack(outs)
    return seq[-1] @ params["fc_w_t"].astype(jnp.float32) + params["fc_b"]


if __name__ == "__main__":
    batch = 2
    seq = 8
    input_dim = 16
    hidden_dim = 32
    num_layers = 2
    output_dim = 4

    key = jax.random.PRNGKey(0)
    key, xk = jax.random.split(key)
    x = jax.random.normal(xk, (batch, seq, input_dim), jnp.float32)

    params = init_lstm_params(key, input_dim, hidden_dim, num_layers, output_dim)

    out = jax.block_until_ready(lstm_forward(params, x, hidden_dim))
    assert out.shape == (batch, output_dim)

    ref = jax.block_until_ready(lstm_forward_ref(params, x, hidden_dim))
    assert jnp.allclose(out, ref, rtol=5e-2, atol=5e-2), (out, ref)

    print("KERNEL_OK")
</pallas_src>

<mosaic_0001>
module attributes {stable_mosaic.version = 11 : i64} {
  func.func @_proj_kernel(%arg0: i32, %arg1: memref<16x16xbf16, #tpu.memory_space<vmem>>, %arg2: memref<16x128xbf16, #tpu.memory_space<vmem>>, %arg3: memref<1x128xf32, #tpu.memory_space<vmem>>, %arg4: memref<16x128xf32, #tpu.memory_space<vmem>>) attributes {dimension_semantics = [#tpu.dimension_semantics<parallel>], iteration_bounds = array<i64: 1>, scalar_prefetch = 0 : i64, scratch_operands = 0 : i64, tpu.core_type = #tpu.core_type<tc>, window_params = [{transform_indices = @transform_0, window_bounds = array<i64: 16, 16>}, {pipeline_mode = #tpu.pipeline_mode<synchronous>, transform_indices = @transform_1, window_bounds = array<i64: 16, 128>}, {pipeline_mode = #tpu.pipeline_mode<synchronous>, transform_indices = @transform_2, window_bounds = array<i64: 1, 128>}, {transform_indices = @transform_3, window_bounds = array<i64: 16, 128>}]} {
    %c0 = arith.constant 0 : index
    %c0_0 = arith.constant 0 : index
    %0 = vector.load %arg1[%c0, %c0_0] : memref<16x16xbf16, #tpu.memory_space<vmem>>, vector<16x16xbf16>
    %c0_1 = arith.constant 0 : index
    %c0_2 = arith.constant 0 : index
    %1 = vector.load %arg2[%c0_1, %c0_2] : memref<16x128xbf16, #tpu.memory_space<vmem>>, vector<16x128xbf16>
    %cst = arith.constant dense<0.000000e+00> : vector<16x128xf32>
    %2 = tpu.matmul %0, %1, %cst {dimension_numbers = #tpu.dot_dimension_numbers<[1], [0], [0], [1], [0, 0, 1, 1], [], []>} : vector<16x16xbf16>, vector<16x128xbf16>, vector<16x128xf32> -> vector<16x128xf32>
    %c0_3 = arith.constant 0 : index
    %c0_4 = arith.constant 0 : index
    %3 = vector.load %arg3[%c0_3, %c0_4] : memref<1x128xf32, #tpu.memory_space<vmem>>, vector<1x128xf32>
    %4 = vector.broadcast %3 : vector<1x128xf32> to vector<16x128xf32>
    %5 = arith.addf %2, %4 : vector<16x128xf32>
    %c0_5 = arith.constant 0 : index
    %c0_6 = arith.constant 0 : index
    %6 = vector.load %arg4[%c0_5, %c0_6] : memref<16x128xf32, #tpu.memory_space<vmem>>, vector<16x128xf32>
    tpu.vector_store %arg4[%c0_5, %c0_6], %5 {strides = array<i32>} : memref<16x128xf32, #tpu.memory_space<vmem>>, vector<16x128xf32>,
    return
  }
  func.func @transform_0(%arg0: i32) -> (i32, i32) {
    %c0_i32 = arith.constant 0 : i32
    %c0_i32_0 = arith.constant 0 : i32
    return %arg0, %c0_i32 : i32, i32
  }
  func.func @transform_1(%arg0: i32) -> (i32, i32) {
    %c0_i32 = arith.constant 0 : i32
    %c0_i32_0 = arith.constant 0 : i32
    %c0_i32_1 = arith.constant 0 : i32
    return %c0_i32, %c0_i32_0 : i32, i32
  }
  func.func @transform_2(%arg0: i32) -> (i32, i32) {
    %c0_i32 = arith.constant 0 : i32
    %c0_i32_0 = arith.constant 0 : i32
    %c0_i32_1 = arith.constant 0 : i32
    return %c0_i32, %c0_i32_0 : i32, i32
  }
  func.func @transform_3(%arg0: i32) -> (i32, i32) {
    %c0_i32 = arith.constant 0 : i32
    %c0_i32_0 = arith.constant 0 : i32
    return %arg0, %c0_i32 : i32, i32
  }
}

</mosaic_0001>

<bundles_post_ra>
// kernel: tpu_custom_call.1
= control target key start
LH: loop header
LB: loop body
LE: loop exit
PB: predicated region body
PF: predicated region fallthrough
CT: control target
= control target key end

     0   :  { %8 = vsyncpa [#allocation3], 0  ;;  %s294_s0 = inlined_call_operand.hbm [shape: bf16[16,16], index: 0, kind: input, shape index: {}]   ;;  %s295_s1 = inlined_call_operand.hbm [shape: bf16[16,128], index: 1, kind: input, shape index: {}]   ;;  %s296_s2 = inlined_call_operand.vmem [shape: f32[1,128], index: 2, kind: input, shape index: {}]   ;;  %s297_s3 = inlined_call_operand.hbm [shape: f32[16,128], index: 3, kind: output, shape index: {}]  }
   0x1   :  { %9 = vsyncpa [#allocation6], 0 }
   0x2   :  { %10 = vsyncpa [#allocation4], 0  ;;  %s226_s12 = smov [#allocation2]   ;;  %s154_s16 = scalar_lea.hbm %s294_s0, 128 }
   0x3   :  { %s16_s13 = sshll.u32 %s226_s12, 4  ;;  %p155_p0 = scmp.ne.s32.totalorder %s294_s0, %s154_s16  ;;  %s17_s13 = int_to_ptr.vmem [resolvable:$true] %s16_s13 }
   0x4   :  { %p158_p1 = scmp.lt.u32.totalorder %s154_s16, %s294_s0 }
   0x6   :  { %p160_p2 = pnand %p158_p1, %p155_p0 }
   0x8   :  { %163 = shalt.err (!%p160_p2)
}
   0x9   :  { %s164_s21 = scalar_lea.vmem %s17_s13, 128  ;;  %p169_p4 = scmp.lt.s32.totalorder %s17_s13, %s17_s13 }
   0xa   :  { %p165_p3 = scmp.ne.s32.totalorder %s17_s13, %s164_s21  ;;  %p170_p5 = scmp.lt.s32.totalorder %s164_s21, %s164_s21 }
   0xc   :  { %p171_p6 = por %p170_p5, %p169_p4 }
   0xe   :  { %p172_p7 = pnand %p171_p6, %p165_p3 }
  0x10   :  { %175 = shalt.err (!%p172_p7)
}
  0x11   :  { %s227_s22 = smov 64   ;;  %s228_s23 = smov 4  }
  0x12   :  { %22 = dma.hbm_to_vmem [thread:$0]  %s294_s0, 128, %s17_s13, [#allocation3], %s227_s22, %s227_s22, %s228_s23  }
  0x13   :  { %s229_s26 = smov [#allocation5]   ;;  %s176_s30 = scalar_lea.hbm %s295_s1, 128 }
  0x14   :  { %s28_s27 = sshll.u32 %s229_s26, 4  ;;  %p177_p8 = scmp.ne.s32.totalorder %s295_s1, %s176_s30  ;;  %s29_s27 = int_to_ptr.vmem [resolvable:$true] %s28_s27 }
  0x15   :  { %p180_p9 = scmp.lt.u32.totalorder %s176_s30, %s295_s1 }
  0x17   :  { %p182_p10 = pnand %p180_p9, %p177_p8 }
  0x19   :  { %185 = shalt.err (!%p182_p10)
}
  0x1a   :  { %s186_s8 = scalar_lea.vmem %s29_s27, 128  ;;  %p191_p12 = scmp.lt.s32.totalorder %s29_s27, %s29_s27 }
  0x1b   :  { %p187_p11 = scmp.ne.s32.totalorder %s29_s27, %s186_s8  ;;  %p192_p13 = scmp.lt.s32.totalorder %s186_s8, %s186_s8 }
  0x1d   :  { %p193_p0 = por %p192_p13, %p191_p12 }
  0x1f   :  { %p194_p1 = pnand %p193_p0, %p187_p11 }
  0x21   :  { %197 = shalt.err (!%p194_p1)
}
  0x22   :  { %34 = dma.hbm_to_vmem [thread:$0]  %s295_s1, 128, %s29_s27, [#allocation6], %s227_s22, %s227_s22, %s228_s23  }
  0x23   :  { %220 = dma.done.wait [#allocation3], 128  }
  0x24   :  { %221 = vsyncadd [#allocation3], 4294967168 }
  0x25   :  { %222 = dma.done.wait [#allocation6], 128  }
  0x26   :  { %223 = vsyncadd [#allocation6], 4294967168  ;;  %v230_v0 = vmov 0.0   ;;  %vm231_vm0 = vmmov 0   ;;  %v152_v1 = vld [vmem:[#allocation5] sm:$0xff]   ;;  %v153_v2 = vld [vmem:[#allocation2] sm:$0xff]  }
  0x27   :  { %137 = vmatprep.subr.bf16.mxu0 %v230_v0  ;;  %139 = vmatprep.mubr.msk.bf16.mxu0 %vm231_vm0, %v230_v0  ;;  %vm66_vm1 = vcmask 130048   ;;  %v131_v3 = vld [vmem:[%s296_s2] ss:$0 sm:$0xff]  ;;  %s232_s12 = smov [#allocation7]  }
  0x28   :  { %138 = vmatpush3.bf16.msra.mxu0 %v152_v1  ;;  %s118_s13 = sshll.u32 %s232_s12, 4  ;;  %s119_s13 = int_to_ptr.vmem [resolvable:$true] %s118_s13 }
  0x29   :  { %s198_s1 = scalar_lea.vmem %s119_s13, 256  ;;  %p203_p3 = scmp.lt.s32.totalorder %s119_s13, %s119_s13 }
  0x2a   :  { %p199_p2 = scmp.ne.s32.totalorder %s119_s13, %s198_s1  ;;  %p204_p4 = scmp.lt.s32.totalorder %s198_s1, %s198_s1 }
  0x2b   :  { %140 = vmatmul.mubr.msk.bf16.vlgmr.msra.gmra.mrb[0].mxu0 %vm66_vm1, %v153_v2 }
  0x2c   :  { %p205_p5 = por %p204_p4, %p203_p3 }
  0x2e   :  { %p206_p6 = pnand %p205_p5, %p199_p2 }
  0xfe   :  { %v104_v4 = vpop.f32.mrb[0].mxu0 }
  0xff   :  { %v105_v5 = vadd.f32 %v131_v3, %v104_v4  ;;  %v141_v6 = vpop.f32.mrb[1].mxu0 }
 0x100   :  { %v107_v7 = vpop.f32.mrb[2].mxu0 }
 0x101   :  { %111 = vst [vmem:[#allocation7] sm:$0xff] %v105_v5  ;;  %v108_v8 = vadd.f32 %v131_v3, %v107_v7  ;;  %v142_v9 = vpop.f32.mrb[3].mxu0 }
 0x103   :  { %112 = vst [vmem:[#allocation7 + $0x8] sm:$0xff] %v108_v8 }
 0x104   :  { %209 = shalt.err (!%p206_p6)
}
 0x105   :  { %s210_s15 = scalar_lea.hbm %s297_s3, 256 }
 0x106   :  { %p211_p7 = scmp.ne.s32.totalorder %s297_s3, %s210_s15  ;;  %p214_p8 = scmp.lt.u32.totalorder %s210_s15, %s297_s3 }
 0x108   :  { %p216_p9 = pnand %p214_p8, %p211_p7 }
 0x10a   :  { %219 = shalt.err (!%p216_p9)
}
 0x10b   :  { %s233_s20 = smov 128   ;;  %s234_s21 = smov 8  }
 0x10c   :  { %124 = dma.vmem_to_hbm [thread:$0]  %s119_s13, 256, %s297_s3, [#allocation4], %s233_s20, %s233_s20, %s234_s21  }
 0x10d   :  { %224 = dma.done.wait [#allocation4], 256  }
 0x10e   :  { %225 = vsyncadd [#allocation4], 4294967040 }
 0x10f   :  { %128 = vsyncpa [#allocation3], 1 }
 0x110   :  { %129 = vsyncpa [#allocation6], 1 }
 0x111   :  { %130 = vsyncpa [#allocation4], 1 }

</bundles_post_ra>
